<compile_context>
chip_gen: v7x
topology: tpu7x:2x2x1
jax: 0.10.0
libtpu: 0.0.40
codegen_flags: <defaults>
</compile_context>

<pallas_src>
import functools

import jax
import jax.numpy as jnp
from jax.experimental import pallas as pl
from jax.experimental.pallas import tpu as pltpu

EPS = 1e-5
_VMEM_LIMIT = 40 * 1024 * 1024      # explicit: fits v7x (64 MiB) with headroom,
                                    # overrides v5e's small 16 MiB default
_DEFAULT_TILE_BYTES = 4 << 20       # ~4 MiB N-tiles: >=90% of HBM roofline on v7x
_FUSED_BYTES_LIMIT = 2 << 20        # x smaller than this -> single fused kernel


# ----------------------------------------------------------------------------
# Kernels
# ----------------------------------------------------------------------------
def _fused_bn_kernel(x_ref, w_ref, b_ref, o_ref, *,
                     n_valid, groups, channels, eps, needs_mask):
    """Whole BatchNorm1d in one kernel (x fully resident in VMEM).

    Exact two-pass centered variance (no cancellation issue); lane-group fold
    done with a pltpu.roll butterfly so per-channel stats end up replicated in
    every lane group (exactly the broadcast needed for the normalize).
    """
    x = x_ref[...].astype(jnp.float32)                       # (nf, lanes)

    valid = None
    if needs_mask:  # static: only emitted when zero-padded rows exist
        row = jax.lax.broadcasted_iota(jnp.int32, x.shape, 0)
        orig = row * groups
        if groups > 1:
            lane = jax.lax.broadcasted_iota(jnp.int32, x.shape, 1)
            orig = orig + lane // channels
        valid = orig < n_valid

    xs = jnp.where(valid, x, 0.0) if needs_mask else x
    s = jnp.sum(xs, axis=0, keepdims=True)                   # (1, lanes)
    # Butterfly all-reduce across the g lane groups (g is a power of two,
    # lanes == 128 whenever g > 1): after log2(g) roll+add steps every lane
    # holds the per-channel total.
    for k in range(groups.bit_length() - 1):
        s = s + pltpu.roll(s, shift=channels * (1 << k), axis=1)
    mean = s * (1.0 / n_valid)                               # lane-replicated

    xc = x - mean
    sq = xc * xc
    if needs_mask:
        sq = jnp.where(valid, sq, 0.0)
    q = jnp.sum(sq, axis=0, keepdims=True)
    for k in range(groups.bit_length() - 1):
        q = q + pltpu.roll(q, shift=channels * (1 << k), axis=1)
    var = q * (1.0 / n_valid)

    inv_std = jax.lax.rsqrt(var + eps)
    scale = w_ref[...] * inv_std
    o_ref[...] = (xc * scale + b_ref[...]).astype(o_ref.dtype)


def _stats_kernel(x_ref, pre_ref, sum_ref, sq_ref, *,
                  tile_rows, tiles_per_shard, groups, channels, n_valid,
                  needs_mask):
    """Pass 1: per-lane sum / sum((x - preshift)^2), one accumulator per shard."""
    s = pl.program_id(0)          # shard ("parallel": one per TensorCore on v7x)
    i = pl.program_id(1)          # tile within the shard ("arbitrary")

    @pl.when(i == 0)
    def _init():
        sum_ref[...] = jnp.zeros_like(sum_ref)
        sq_ref[...] = jnp.zeros_like(sq_ref)

    # Pre-shift (row 0 of x, per channel) keeps the accumulated values near
    # zero-mean so the E[(x-p)^2] - E[x-p]^2 finalize does not cancel.
    x = x_ref[...].astype(jnp.float32) - pre_ref[...]

    if needs_mask:  # static: ragged last tile, zero-padded rows, or dup clamp
        row = jax.lax.broadcasted_iota(jnp.int32, x.shape, 0)
        tile0 = (s * tiles_per_shard + i) * tile_rows        # UNclamped offset
        orig = (tile0 + row) * groups
        if groups > 1:
            lane = jax.lax.broadcasted_iota(jnp.int32, x.shape, 1)
            orig = orig + lane // channels
        x = jnp.where(orig < n_valid, x, 0.0)

    sum_ref[...] += jnp.sum(x, axis=0, keepdims=True)[None]
    sq_ref[...] += jnp.sum(x * x, axis=0, keepdims=True)[None]


def _normalize_kernel(x_ref, scale_ref, shift_ref, o_ref):
    """Pass 2: y = x * scale + shift (gamma/beta/mean/inv_std pre-folded)."""
    y = x_ref[...].astype(jnp.float32) * scale_ref[...] + shift_ref[...]
    o_ref[...] = y.astype(o_ref.dtype)


# ----------------------------------------------------------------------------
# Wrapper
# ----------------------------------------------------------------------------
def _tile_rows(nf, row_bytes, itemsize, max_tile_bytes):
    """Largest multiple-of-8 row tile <= max_tile_bytes that leaves >= 2 tiles."""
    sub = max(8, 32 // itemsize)                   # f32 -> 8, bf16 -> 16, int8 -> 32
    tn = max(sub, (max_tile_bytes // row_bytes) // sub * sub)
    tn = min(tn, (nf // sub) * sub)                # keep the block inside the array
    half = max(sub, -(-((nf + 1) // 2) // sub) * sub)
    tn = min(tn, half)                             # grid_n >= 2 -> both v7x TCs busy
    return max(tn, sub)


def batchnorm1d_pallas(feats, weight, bias, eps=EPS,
                       max_tile_bytes=_DEFAULT_TILE_BYTES,
                       fused_bytes_limit=_FUSED_BYTES_LIMIT):
    """Training-mode BatchNorm1d forward on (N, C) SparseTensor features."""
    n, c = feats.shape
    out_dtype = feats.dtype
    itemsize = jnp.dtype(feats.dtype).itemsize

    # ---- lane-dense view: (N, C) -> (N/g, g*C), padding N up to a multiple of g
    g = 128 // c if (c < 128 and 128 % c == 0) else 1
    n_pad = ((n + g - 1) // g) * g
    padded = n_pad != n
    x = jnp.pad(feats, ((0, n_pad - n), (0, 0))) if padded else feats
    nf = n_pad // g
    lanes = g * c
    xf = x.reshape(nf, lanes)                       # contiguous -> free relayout

    w32 = weight.astype(jnp.float32)
    b32 = bias.astype(jnp.float32)
    wl = jnp.tile(w32, g).reshape(1, lanes)
    bl = jnp.tile(b32, g).reshape(1, lanes)

    x_bytes = nf * lanes * itemsize

    # ---- small/medium inputs: single fused kernel (x read from HBM once) -----
    if x_bytes <= fused_bytes_limit or nf < 8:
        out_f = pl.pallas_call(
            functools.partial(_fused_bn_kernel, n_valid=n, groups=g, channels=c,
                              eps=eps, needs_mask=padded),
            out_shape=jax.ShapeDtypeStruct((nf, lanes), out_dtype),
            grid=(1,),
            in_specs=[pl.BlockSpec((nf, lanes), lambda i: (0, 0)),
                      pl.BlockSpec((1, lanes), lambda i: (0, 0)),
                      pl.BlockSpec((1, lanes), lambda i: (0, 0))],
            out_specs=pl.BlockSpec((nf, lanes), lambda i: (0, 0)),
            compiler_params=pltpu.CompilerParams(
                dimension_semantics=("arbitrary",),
                vmem_limit_bytes=_VMEM_LIMIT),
        )(xf, wl, bl)
        out = out_f.reshape(n_pad, c)
        return out[:n] if padded else out

    # ---- large inputs: two streaming passes ----------------------------------
    row_bytes = lanes * itemsize
    tn = _tile_rows(nf, row_bytes, itemsize, max_tile_bytes)
    grid_n = pl.cdiv(nf, tn)

    num_shards = 2 if grid_n >= 2 else 1            # one shard per v7x TensorCore
    tps = pl.cdiv(grid_n, num_shards)
    covered = num_shards * tps * tn
    needs_mask = (covered != nf) or padded
    last_blk = grid_n - 1

    # Per-channel pre-shift (row 0) for numerically stable variance.
    pre_ch = feats[0].astype(jnp.float32)
    pre_l = jnp.tile(pre_ch, g).reshape(1, lanes)

    # pass 1: per-lane sum / sum((x-p)^2), sharded across TensorCores.
    sums, sqs = pl.pallas_call(
        functools.partial(_stats_kernel, tile_rows=tn, tiles_per_shard=tps,
                          groups=g, channels=c, n_valid=n,
                          needs_mask=needs_mask),
        out_shape=(jax.ShapeDtypeStruct((num_shards, 1, lanes), jnp.float32),
                   jax.ShapeDtypeStruct((num_shards, 1, lanes), jnp.float32)),
        grid_spec=pltpu.PrefetchScalarGridSpec(
            num_scalar_prefetch=0,
            grid=(num_shards, tps),
            in_specs=[
                # Clamp so the DMA never reads past the array; the (unclamped)
                # row mask in the kernel zeroes any duplicate/ragged rows.
                pl.BlockSpec((tn, lanes),
                             lambda s, i: (jnp.minimum(s * tps + i, last_blk), 0)),
                pl.BlockSpec((1, lanes), lambda s, i: (0, 0)),
            ],
            out_specs=(pl.BlockSpec((1, 1, lanes), lambda s, i: (s, 0, 0)),
                       pl.BlockSpec((1, 1, lanes), lambda s, i: (s, 0, 0))),
        ),
        compiler_params=pltpu.CompilerParams(
            dimension_semantics=("parallel", "arbitrary"),
            vmem_limit_bytes=_VMEM_LIMIT),
    )(xf, pre_l)

    # tiny per-channel finalize (C elements; plain JAX, negligible).
    s_lane = sums.reshape(num_shards, lanes).sum(axis=0)
    q_lane = sqs.reshape(num_shards, lanes).sum(axis=0)
    s_ch = s_lane.reshape(g, c).sum(axis=0)
    q_ch = q_lane.reshape(g, c).sum(axis=0)
    m1 = s_ch / n                                   # mean of (x - preshift)
    mean = pre_ch + m1
    var = jnp.maximum(q_ch / n - m1 * m1, 0.0)      # biased var, like BN training
    inv_std = jax.lax.rsqrt(var + eps)
    scale = w32 * inv_std
    shift = b32 - mean * scale
    scale_l = jnp.tile(scale, g).reshape(1, lanes)
    shift_l = jnp.tile(shift, g).reshape(1, lanes)

    # pass 2: streaming normalize (lane-dense, double-buffered, megacore-parallel).
    out_f = pl.pallas_call(
        _normalize_kernel,
        out_shape=jax.ShapeDtypeStruct((nf, lanes), out_dtype),
        grid_spec=pltpu.PrefetchScalarGridSpec(
            num_scalar_prefetch=0,
            grid=(grid_n,),
            in_specs=[pl.BlockSpec((tn, lanes), lambda i: (i, 0)),
                      pl.BlockSpec((1, lanes), lambda i: (0, 0)),
                      pl.BlockSpec((1, lanes), lambda i: (0, 0))],
            out_specs=pl.BlockSpec((tn, lanes), lambda i: (i, 0)),
        ),
        compiler_params=pltpu.CompilerParams(
            dimension_semantics=("parallel",),
            vmem_limit_bytes=_VMEM_LIMIT),
    )(xf, scale_l, shift_l)

    # TODO(synk): running_mean/running_var buffer updates (unbiased var, momentum)
    # are module state, not part of the returned activation; not computed here.
    out = out_f.reshape(n_pad, c)
    return out[:n] if padded else out


def batchnorm1d_ref(feats, weight, bias, eps=EPS):
    x = feats.astype(jnp.float32)
    mean = jnp.mean(x, axis=0, keepdims=True)
    var = jnp.mean((x - mean) ** 2, axis=0, keepdims=True)
    y = (x - mean) * jax.lax.rsqrt(var + eps) * weight[None, :] + bias[None, :]
    return y.astype(feats.dtype)


if __name__ == "__main__":
    key = jax.random.PRNGKey(0)
    k1, k2, k3 = jax.random.split(key, 3)

    def check(feats, w, b, name, **kw):
        out = jax.block_until_ready(batchnorm1d_pallas(feats, w, b, **kw))
        ref = batchnorm1d_ref(feats, w, b)
        assert out.shape == feats.shape, f"shape mismatch ({name})"
        assert jnp.allclose(out, ref, atol=1e-4, rtol=1e-4), f"mismatch vs ref ({name})"

    # SparseTensor.feats is (N points, C channels); BatchNorm1d over C.
    N, C = 256, 32
    feats = jax.random.normal(k1, (N, C), dtype=jnp.float32) * 1.5 + 0.3
    weight = 1.0 + 0.1 * jax.random.normal(k2, (C,), dtype=jnp.float32)
    bias = 0.1 * jax.random.normal(k3, (C,), dtype=jnp.float32)

    # 1) small input -> fused single-kernel path (lane-dense, g = 4).
    check(feats, weight, bias, "fused")

    # 2) force the two-pass path with an even tile split (no masking),
    #    TensorCore-sharded stats pass.
    check(feats, weight, bias, "two-pass even",
          fused_bytes_limit=0, max_tile_bytes=16384)

    # 3) two-pass path with a ragged tile grid (remainder-row masking).
    feats2 = jax.random.normal(k1, (200, 32), dtype=jnp.float32) * 2.0 - 0.7
    check(feats2, jnp.ones((32,), jnp.float32), jnp.zeros((32,), jnp.float32),
          "two-pass ragged", fused_bytes_limit=0, max_tile_bytes=8192)

    # 4) N not divisible by the lane-group size -> zero-padded lane-dense path;
    #    offset data exercises the centered/pre-shifted variance numerics.
    feats3 = jax.random.normal(k2, (203, 16), dtype=jnp.float32) + 5.0
    w3 = 1.0 + 0.05 * jax.random.normal(k3, (16,), dtype=jnp.float32)
    b3 = 0.2 * jnp.ones((16,), dtype=jnp.float32)
    check(feats3, w3, b3, "padded fused")
    check(feats3, jnp.ones((16,), jnp.float32), jnp.zeros((16,), jnp.float32),
          "padded two-pass", fused_bytes_limit=0, max_tile_bytes=4096)

    # 5) C that does not divide 128 -> g = 1 fallback (still correct).
    feats4 = jax.random.normal(k1, (64, 48), dtype=jnp.float32)
    check(feats4, jnp.ones((48,), jnp.float32), jnp.zeros((48,), jnp.float32),
          "g1 fallback")

    # TODO(synk): post_fapply only re-attaches coords/stride to the new feats
    # (pure bookkeeping, no compute) -- the kernel returns the new feats tensor.
    print("KERNEL_OK")
</pallas_src>

<mosaic_0001>
module attributes {stable_mosaic.version = 11 : i64} {
  func.func @_fused_bn_kernel(%arg0: i32, %arg1: memref<64x128xf32, #tpu.memory_space<vmem>>, %arg2: memref<1x128xf32, #tpu.memory_space<vmem>>, %arg3: memref<1x128xf32, #tpu.memory_space<vmem>>, %arg4: memref<64x128xf32, #tpu.memory_space<vmem>>) attributes {dimension_semantics = [#tpu.dimension_semantics<arbitrary>], iteration_bounds = array<i64: 1>, scalar_prefetch = 0 : i64, scratch_operands = 0 : i64, tpu.core_type = #tpu.core_type<tc>, window_params = [{pipeline_mode = #tpu.pipeline_mode<synchronous>, transform_indices = @transform_0, window_bounds = array<i64: 64, 128>}, {pipeline_mode = #tpu.pipeline_mode<synchronous>, transform_indices = @transform_1, window_bounds = array<i64: 1, 128>}, {pipeline_mode = #tpu.pipeline_mode<synchronous>, transform_indices = @transform_2, window_bounds = array<i64: 1, 128>}, {pipeline_mode = #tpu.pipeline_mode<synchronous>, transform_indices = @transform_3, window_bounds = array<i64: 64, 128>}]} {
    %c0 = arith.constant 0 : index
    %c0_0 = arith.constant 0 : index
    %0 = vector.load %arg1[%c0, %c0_0] : memref<64x128xf32, #tpu.memory_space<vmem>>, vector<64x128xf32>
    %cst = arith.constant dense<0.000000e+00> : vector<128xf32>
    %1 = vector.multi_reduction <add>, %0, %cst [0] : vector<64x128xf32> to vector<128xf32>
    %2 = vector.shape_cast %1 : vector<128xf32> to vector<1x128xf32>
    %c32_i32 = arith.constant 32 : i32
    %3 = tpu.dynamic_rotate %2 by %c32_i32 dim 1 : vector<1x128xf32>, i32 -> vector<1x128xf32>
    %4 = arith.addf %2, %3 : vector<1x128xf32>
    %c64_i32 = arith.constant 64 : i32
    %5 = tpu.dynamic_rotate %4 by %c64_i32 dim 1 : vector<1x128xf32>, i32 -> vector<1x128xf32>
    %6 = arith.addf %4, %5 : vector<1x128xf32>
    %cst_1 = arith.constant 3.906250e-03 : f32
    %7 = vector.broadcast %cst_1 : f32 to vector<1x128xf32>
    %8 = arith.mulf %6, %7 : vector<1x128xf32>
    %9 = vector.broadcast %8 : vector<1x128xf32> to vector<64x128xf32>
    %10 = arith.subf %0, %9 : vector<64x128xf32>
    %11 = arith.mulf %10, %10 : vector<64x128xf32>
    %cst_2 = arith.constant dense<0.000000e+00> : vector<128xf32>
    %12 = vector.multi_reduction <add>, %11, %cst_2 [0] : vector<64x128xf32> to vector<128xf32>
    %13 = vector.shape_cast %12 : vector<128xf32> to vector<1x128xf32>
    %c32_i32_3 = arith.constant 32 : i32
    %14 = tpu.dynamic_rotate %13 by %c32_i32_3 dim 1 : vector<1x128xf32>, i32 -> vector<1x128xf32>
    %15 = arith.addf %13, %14 : vector<1x128xf32>
    %c64_i32_4 = arith.constant 64 : i32
    %16 = tpu.dynamic_rotate %15 by %c64_i32_4 dim 1 : vector<1x128xf32>, i32 -> vector<1x128xf32>
    %17 = arith.addf %15, %16 : vector<1x128xf32>
    %cst_5 = arith.constant 3.906250e-03 : f32
    %18 = vector.broadcast %cst_5 : f32 to vector<1x128xf32>
    %19 = arith.mulf %17, %18 : vector<1x128xf32>
    %cst_6 = arith.constant 9.99999974E-6 : f32
    %20 = vector.broadcast %cst_6 : f32 to vector<1x128xf32>
    %21 = arith.addf %19, %20 : vector<1x128xf32>
    %22 = math.rsqrt %21 : vector<1x128xf32>
    %c0_7 = arith.constant 0 : index
    %c0_8 = arith.constant 0 : index
    %23 = vector.load %arg2[%c0_7, %c0_8] : memref<1x128xf32, #tpu.memory_space<vmem>>, vector<1x128xf32>
    %24 = arith.mulf %23, %22 : vector<1x128xf32>
    %25 = vector.broadcast %24 : vector<1x128xf32> to vector<64x128xf32>
    %26 = arith.mulf %10, %25 : vector<64x128xf32>
    %c0_9 = arith.constant 0 : index
    %c0_10 = arith.constant 0 : index
    %27 = vector.load %arg3[%c0_9, %c0_10] : memref<1x128xf32, #tpu.memory_space<vmem>>, vector<1x128xf32>
    %28 = vector.broadcast %27 : vector<1x128xf32> to vector<64x128xf32>
    %29 = arith.addf %26, %28 : vector<64x128xf32>
    %c0_11 = arith.constant 0 : index
    %c0_12 = arith.constant 0 : index
    %30 = vector.load %arg4[%c0_11, %c0_12] : memref<64x128xf32, #tpu.memory_space<vmem>>, vector<64x128xf32>
    tpu.vector_store %arg4[%c0_11, %c0_12], %29 {strides = array<i32>} : memref<64x128xf32, #tpu.memory_space<vmem>>, vector<64x128xf32>,
    return
  }
  func.func @transform_0(%arg0: i32) -> (i32, i32) {
    %c0_i32 = arith.constant 0 : i32
    %c0_i32_0 = arith.constant 0 : i32
    %c0_i32_1 = arith.constant 0 : i32
    return %c0_i32, %c0_i32_0 : i32, i32
  }
  func.func @transform_1(%arg0: i32) -> (i32, i32) {
    %c0_i32 = arith.constant 0 : i32
    %c0_i32_0 = arith.constant 0 : i32
    %c0_i32_1 = arith.constant 0 : i32
    return %c0_i32, %c0_i32_0 : i32, i32
  }
  func.func @transform_2(%arg0: i32) -> (i32, i32) {
    %c0_i32 = arith.constant 0 : i32
    %c0_i32_0 = arith.constant 0 : i32
    %c0_i32_1 = arith.constant 0 : i32
    return %c0_i32, %c0_i32_0 : i32, i32
  }
  func.func @transform_3(%arg0: i32) -> (i32, i32) {
    %c0_i32 = arith.constant 0 : i32
    %c0_i32_0 = arith.constant 0 : i32
    %c0_i32_1 = arith.constant 0 : i32
    return %c0_i32, %c0_i32_0 : i32, i32
  }
}

</mosaic_0001>

<bundles_post_ra>
// kernel: tpu_custom_call.1
= control target key start
LH: loop header
LB: loop body
LE: loop exit
PB: predicated region body
PF: predicated region fallthrough
CT: control target
= control target key end

     0   :  { %8 = vsyncpa [#allocation3], 0  ;;  %s278_s0 = inlined_call_operand.hbm [shape: f32[64,128], index: 0, kind: input, shape index: {}]   ;;  %s279_s1 = inlined_call_operand.vmem [shape: f32[1,128], index: 1, kind: input, shape index: {}]   ;;  %s280_s2 = inlined_call_operand.vmem [shape: f32[1,128], index: 2, kind: input, shape index: {}]   ;;  %s281_s3 = inlined_call_operand.hbm [shape: f32[64,128], index: 3, kind: output, shape index: {}]  }
   0x1   :  { %9 = vsyncpa [#allocation4], 0  ;;  %s212_s12 = smov [#allocation2]   ;;  %s164_s16 = scalar_lea.hbm %s278_s0, 1024 }
   0x2   :  { %s15_s13 = sshll.u32 %s212_s12, 4  ;;  %p165_p0 = scmp.ne.s32.totalorder %s278_s0, %s164_s16  ;;  %s16_s13 = int_to_ptr.vmem [resolvable:$true] %s15_s13 }
   0x3   :  { %p168_p1 = scmp.lt.u32.totalorder %s164_s16, %s278_s0 }
   0x5   :  { %p170_p2 = pnand %p168_p1, %p165_p0 }
   0x7   :  { %173 = shalt.err (!%p170_p2)
}
   0x8   :  { %s174_s21 = scalar_lea.vmem %s16_s13, 1024  ;;  %p179_p4 = scmp.lt.s32.totalorder %s16_s13, %s16_s13 }
   0x9   :  { %p175_p3 = scmp.ne.s32.totalorder %s16_s13, %s174_s21  ;;  %p180_p5 = scmp.lt.s32.totalorder %s174_s21, %s174_s21 }
   0xb   :  { %p181_p6 = por %p180_p5, %p179_p4 }
   0xd   :  { %p182_p7 = pnand %p181_p6, %p175_p3 }
   0xf   :  { %185 = shalt.err (!%p182_p7)
}
  0x10   :  { %s213_s22 = smov 128   ;;  %s214_s23 = smov 8  }
  0x11   :  { %21 = dma.hbm_to_vmem [thread:$0]  %s278_s0, 1024, %s16_s13, [#allocation3], %s213_s22, %s213_s22, %s214_s23  }
  0x12   :  { %208 = dma.done.wait [#allocation3], 1024  }
  0x13   :  { %209 = vsyncadd [#allocation3], 4294966272  ;;  %v29_v0 = vld [vmem:[#allocation2] sm:$0xff]  ;;  %v30_v1 = vld [vmem:[#allocation2 + $0x8] sm:$0xff]  ;;  %s215_s0 = smov 32   ;;  %s216_s26 = smov 64   ;;  %v57_v23 = vlaneseq }
  0x14   :  { %v31_v2 = vld [vmem:[#allocation2 + $0x10] sm:$0xff]  ;;  %v37_v3 = vadd.f32 %v30_v1, %v29_v0  ;;  %v32_v4 = vld [vmem:[#allocation2 + $0x18] sm:$0xff]  ;;  %v33_v6 = vld [vmem:[#allocation2 + $0x20] sm:$0xff]  ;;  %s217_s4 = smov [#allocation5]  }
  0x15   :  { %v34_v8 = vld [vmem:[#allocation2 + $0x28] sm:$0xff]  ;;  %v35_v10 = vld [vmem:[#allocation2 + $0x30] sm:$0xff]  ;;  %v36_v12 = vld [vmem:[#allocation2 + $0x38] sm:$0xff]  ;;  %v58_v24 = vshrl.u32 %v57_v23, 7  ;;  %s143_s5 = sshll.u32 %s217_s4, 4  ;;  %s144_s5 = int_to_ptr.vmem [resolvable:$true] %s143_s5 }
  0x16   :  { %v38_v5 = vadd.f32 %v37_v3, %v31_v2  ;;  %p191_p9 = scmp.lt.s32.totalorder %s144_s5, %s144_s5 }
  0x17   :  { %v59_v26 = vsub.s32 0, %v58_v24 }
  0x18   :  { %v39_v7 = vadd.f32 %v38_v5, %v32_v4  ;;  %v155_v5 = vld [vmem:[%s280_s2] ss:$0 sm:$0xff] }
  0x1a   :  { %v40_v9 = vadd.f32 %v39_v7, %v33_v6 }
  0x1c   :  { %v41_v11 = vadd.f32 %v40_v9, %v34_v8 }
  0x1e   :  { %v42_v13 = vadd.f32 %v41_v11, %v35_v10 }
  0x20   :  { %v43_v14 = vadd.f32 %v42_v13, %v36_v12 }
  0x22   :  { %v44_v15 = vrot.slane %v43_v14, 4 }
  0x24   :  { %v45_v16 = vadd.f32 %v44_v15, %v43_v14 }
  0x26   :  { %v46_v17 = vrot.slane %v45_v16, 2 }
  0x28   :  { %v47_v18 = vadd.f32 %v46_v17, %v45_v16 }
  0x2a   :  { %v48_v19 = vrot.slane %v47_v18, 1 }
  0x2c   :  { %v49_v20 = vadd.f32 %v48_v19, %v47_v18 }
  0x2e   :  { %50 = vrot.lane.b32.xlu0 %v49_v20, %s215_s0 }
  0xa0   :  { %v51_v21 = vpop.permute.xlu0 %50 }
  0xa1   :  { %v52_v22 = vadd.f32 %v51_v21, %v49_v20 }
  0xa3   :  { %53 = vrot.lane.b32.xlu0 %v52_v22, %s216_s26 }
 0x115   :  { %v54_v25 = vpop.permute.xlu0 %53 }
 0x116   :  { %v55_v27 = vadd.f32 %v54_v25, %v52_v22 }
 0x118   :  { %v56_v28 = vmul.f32 0.00390625, %v55_v27 }
 0x11a   :  { %v60_v29 = vrot.slane %v56_v28, %v59_v26 }
 0x11c   :  { %v61_v30 = vsub.f32 %v29_v0, %v60_v29  ;;  %v62_v31 = vsub.f32 %v30_v1, %v60_v29  ;;  %v63_v32 = vsub.f32 %v31_v2, %v60_v29  ;;  %v64_v33 = vsub.f32 %v32_v4, %v60_v29  ;;  %v99_v1 = vld [vmem:[%s279_s1] sm:$0x1]  ;;  %s186_s1 = scalar_lea.vmem %s144_s5, 1024 }
 0x11d   :  { %v65_v36 = vsub.f32 %v33_v6, %v60_v29  ;;  %v66_v39 = vsub.f32 %v34_v8, %v60_v29  ;;  %v67_v42 = vsub.f32 %v35_v10, %v60_v29  ;;  %v68_v45 = vsub.f32 %v36_v12, %v60_v29  ;;  %p187_p8 = scmp.ne.s32.totalorder %s144_s5, %s186_s1  ;;  %p192_p10 = scmp.lt.s32.totalorder %s186_s1, %s186_s1 }
 0x11e   :  { %v69_v34 = vmul.f32 %v61_v30, %v61_v30  ;;  %v70_v35 = vmul.f32 %v62_v31, %v62_v31  ;;  %v71_v37 = vmul.f32 %v63_v32, %v63_v32  ;;  %v72_v40 = vmul.f32 %v64_v33, %v64_v33 }
 0x11f   :  { %v73_v43 = vmul.f32 %v65_v36, %v65_v36  ;;  %v74_v46 = vmul.f32 %v66_v39, %v66_v39  ;;  %v75_v48 = vmul.f32 %v67_v42, %v67_v42  ;;  %v76_v50 = vmul.f32 %v68_v45, %v68_v45  ;;  %p193_p11 = por %p192_p10, %p191_p9 }
 0x120   :  { %v77_v38 = vadd.f32 %v70_v35, %v69_v34 }
 0x121   :  { %p194_p12 = pnand %p193_p11, %p187_p8 }
 0x122   :  { %v78_v41 = vadd.f32 %v77_v38, %v71_v37 }
 0x124   :  { %v79_v44 = vadd.f32 %v78_v41, %v72_v40 }
 0x126   :  { %v80_v47 = vadd.f32 %v79_v44, %v73_v43 }
 0x128   :  { %v81_v49 = vadd.f32 %v80_v47, %v74_v46 }
 0x12a   :  { %v82_v51 = vadd.f32 %v81_v49, %v75_v48 }
 0x12c   :  { %v83_v52 = vadd.f32 %v82_v51, %v76_v50 }
 0x12e   :  { %v84_v53 = vrot.slane %v83_v52, 4 }
 0x130   :  { %v85_v54 = vadd.f32 %v84_v53, %v83_v52 }
 0x132   :  { %v86_v55 = vrot.slane %v85_v54, 2 }
 0x134   :  { %v87_v56 = vadd.f32 %v86_v55, %v85_v54 }
 0x136   :  { %v88_v57 = vrot.slane %v87_v56, 1 }
 0x138   :  { %v89_v58 = vadd.f32 %v88_v57, %v87_v56 }
 0x13a   :  { %90 = vrot.lane.b32.xlu1 %v89_v58, %s215_s0 }
 0x1ac   :  { %v91_v59 = vpop.permute.xlu1 %90 }
 0x1ad   :  { %v92_v60 = vadd.f32 %v91_v59, %v89_v58 }
 0x1af   :  { %93 = vrot.lane.b32.xlu1 %v92_v60, %s216_s26 }
 0x221   :  { %v94_v61 = vpop.permute.xlu1 %93 }
 0x222   :  { %v95_v62 = vadd.f32 %v94_v61, %v92_v60 }
 0x224   :  { %v96_v63 = vmul.f32 0.00390625, %v95_v62 }
 0x226   :  { %v97_v0 = vadd.f32 1e-05, %v96_v63 }
 0x228   :  { %162 = vrsqrt.f32 %v97_v0 }
 0x232   :  { %v163_v2 = vpop.eup %162 }
 0x233   :  { %v100_v3 = vmul.f32 %v163_v2, %v99_v1 }
 0x235   :  { %v105_v4 = vrot.slane %v100_v3, %v59_v26 }
 0x237   :  { %v107_v6 = vmul.f32 %v105_v4, %v61_v30  ;;  %v108_v7 = vmul.f32 %v105_v4, %v62_v31  ;;  %v109_v8 = vmul.f32 %v105_v4, %v63_v32  ;;  %v110_v9 = vmul.f32 %v105_v4, %v64_v33 }
 0x238   :  { %v111_v10 = vmul.f32 %v105_v4, %v65_v36  ;;  %v112_v11 = vmul.f32 %v105_v4, %v66_v39  ;;  %v113_v12 = vmul.f32 %v105_v4, %v67_v42  ;;  %v114_v13 = vmul.f32 %v105_v4, %v68_v45 }
 0x239   :  { %v122_v14 = vadd.f32 %v155_v5, %v107_v6  ;;  %v123_v15 = vadd.f32 %v155_v5, %v108_v7  ;;  %v124_v16 = vadd.f32 %v155_v5, %v109_v8  ;;  %v125_v17 = vadd.f32 %v155_v5, %v110_v9 }
 0x23a   :  { %v126_v18 = vadd.f32 %v155_v5, %v111_v10  ;;  %v127_v19 = vadd.f32 %v155_v5, %v112_v11  ;;  %v128_v20 = vadd.f32 %v155_v5, %v113_v12  ;;  %v129_v21 = vadd.f32 %v155_v5, %v114_v13 }
 0x23b   :  { %130 = vst [vmem:[#allocation5] sm:$0xff] %v122_v14  ;;  %131 = vst [vmem:[#allocation5 + $0x8] sm:$0xff] %v123_v15 }
 0x23c   :  { %132 = vst [vmem:[#allocation5 + $0x10] sm:$0xff] %v124_v16  ;;  %133 = vst [vmem:[#allocation5 + $0x18] sm:$0xff] %v125_v17 }
 0x23d   :  { %134 = vst [vmem:[#allocation5 + $0x20] sm:$0xff] %v126_v18  ;;  %135 = vst [vmem:[#allocation5 + $0x28] sm:$0xff] %v127_v19 }
 0x23e   :  { %136 = vst [vmem:[#allocation5 + $0x30] sm:$0xff] %v128_v20  ;;  %137 = vst [vmem:[#allocation5 + $0x38] sm:$0xff] %v129_v21 }
 0x23f   :  { %197 = shalt.err (!%p194_p12)
}
 0x240   :  { %s198_s7 = scalar_lea.hbm %s281_s3, 1024 }
 0x241   :  { %p199_p13 = scmp.ne.s32.totalorder %s281_s3, %s198_s7  ;;  %p202_p0 = scmp.lt.u32.totalorder %s198_s7, %s281_s3 }
 0x243   :  { %p204_p1 = pnand %p202_p0, %p199_p13 }
 0x245   :  { %207 = shalt.err (!%p204_p1)
}
 0x246   :  { %149 = dma.vmem_to_hbm [thread:$0]  %s144_s5, 1024, %s281_s3, [#allocation4], %s213_s22, %s213_s22, %s214_s23  }
 0x247   :  { %210 = dma.done.wait [#allocation4], 1024  }
 0x248   :  { %211 = vsyncadd [#allocation4], 4294966272 }
 0x249   :  { %153 = vsyncpa [#allocation3], 1 }
 0x24a   :  { %154 = vsyncpa [#allocation4], 1 }

</bundles_post_ra>
